<compile_context>
chip_gen: v6e
topology: v6e:2x2x1
jax: 0.10.0
libtpu: 0.0.40
codegen_flags: <defaults>
</compile_context>

<pallas_src>
import math
import numpy as np

import jax
import jax.numpy as jnp
from jax.experimental import pallas as pl
from jax.experimental.pallas import tpu as pltpu

F32 = jnp.float32

_VMEM_BUDGET = 12 * 1024 * 1024   # stay under the v5e scoped-VMEM default (16 MiB)


# ----------------------------------------------------------------------------
# numpy setup helpers (filter taps / band matrices: host-side glue)
# ----------------------------------------------------------------------------
def gaussian_1d(size, sigma):
    """Equivalent of cv2.getGaussianKernel(size, sigma) for sigma > 0."""
    ax = np.arange(size, dtype=np.float64) - (size - 1) / 2.0
    g = np.exp(-(ax ** 2) / (2.0 * sigma ** 2))
    return (g / g.sum()).astype(np.float32)


def band_matrix(w1d, n):
    """B[i, j] = w1d[j - i + p] (zero outside the band).
    (B @ x) applies the zero-padded 'same' correlation along the first axis,
    (x @ B.T) along the last axis -- the padding is folded into the band, so
    no padded copy of the input is ever materialized."""
    w1d = np.asarray(w1d, np.float32)
    k = int(w1d.shape[0])
    p = (k - 1) // 2
    m = np.zeros((n, n), np.float32)
    for i in range(n):
        for j in range(max(0, i - p), min(n, i + p + 1)):
            m[i, j] = w1d[j - i + p]
    return m


def _largest_divisor_leq(n, cap):
    cap = max(1, min(int(cap), int(n)))
    for t in range(cap, 0, -1):
        if n % t == 0:
            return t
    return 1


def _gather_feat(feat_nchw, ind_bk):
    """_tranpose_and_gather_feat: gather first, transpose only the small
    (B, D, K) result (no full-map NCHW->NHWC transpose)."""
    B, D, H, W = feat_nchw.shape
    K = ind_bk.shape[1]
    feat = feat_nchw.reshape(B, D, H * W)
    idx = jnp.broadcast_to(ind_bk[:, None, :].astype(jnp.int32), (B, D, K))
    g = jnp.take_along_axis(feat, idx, axis=2)            # (B, D, K)  -- glue
    return jnp.transpose(g, (0, 2, 1))                    # (B, K, D)


# ----------------------------------------------------------------------------
# focal loss (clamped sigmoid + CenterNet focal), gridded over plane blocks
# ----------------------------------------------------------------------------
def _focal_kernel(x_ref, gt_ref, s_ref):
    @pl.when(pl.program_id(0) == 0)
    def _():
        s_ref[0] = jnp.float32(0.0)
        s_ref[1] = jnp.float32(0.0)
        s_ref[2] = jnp.float32(0.0)

    pred = jnp.clip(jax.nn.sigmoid(x_ref[...]), 1e-4, 1.0 - 1e-4)
    gt = gt_ref[...]
    pos = (gt == 1.0).astype(F32)
    neg = (gt < 1.0).astype(F32)
    omg = 1.0 - gt
    neg_w = (omg * omg) * (omg * omg)          # (1-gt)^4 via two squarings (no pow/EUP)
    pos_loss = jnp.log(pred) * jnp.square(1.0 - pred) * pos
    neg_loss = jnp.log(1.0 - pred) * jnp.square(pred) * neg_w * neg
    s_ref[0] += jnp.sum(pos_loss)
    s_ref[1] += jnp.sum(neg_loss)
    s_ref[2] += jnp.sum(pos)


def focal_loss(hm_raw, hm_gt):
    B, C, H, W = hm_raw.shape
    P = B * C
    tb = _largest_divisor_leq(P, min(max(1, _VMEM_BUDGET // (8 * H * W * 4)), 8))
    sums = pl.pallas_call(
        _focal_kernel,
        out_shape=jax.ShapeDtypeStruct((3,), F32),
        grid=(P // tb,),
        in_specs=[pl.BlockSpec((tb, H, W), lambda i: (i, 0, 0)),
                  pl.BlockSpec((tb, H, W), lambda i: (i, 0, 0))],
        out_specs=pl.BlockSpec(memory_space=pltpu.MemorySpace.SMEM),
        compiler_params=pltpu.CompilerParams(dimension_semantics=("arbitrary",)),
    )(hm_raw.reshape(P, H, W).astype(F32), hm_gt.reshape(P, H, W).astype(F32))
    pos_sum, neg_sum, num_pos = sums[0], sums[1], sums[2]
    return jnp.where(num_pos > 0,
                     -(pos_sum + neg_sum) / jnp.maximum(num_pos, 1.0),
                     -neg_sum)


# ----------------------------------------------------------------------------
# RegL1Loss, gridded over batch
# ----------------------------------------------------------------------------
def _regl1_kernel(pred_ref, tgt_ref, mask_ref, s_ref):
    @pl.when(pl.program_id(0) == 0)
    def _():
        s_ref[0] = jnp.float32(0.0)
        s_ref[1] = jnp.float32(0.0)
    pred = pred_ref[0]                              # (K, D)
    tgt = tgt_ref[0]
    m = mask_ref[0]                                 # (K, 1)
    s_ref[0] += jnp.sum(jnp.abs(pred * m - tgt * m))
    s_ref[1] += jnp.sum(m) * float(pred.shape[-1])  # mask expanded over last dim


def reg_l1_loss(feat_nchw, mask_bk, ind_bk, target_bkd):
    B, D = feat_nchw.shape[0], feat_nchw.shape[1]
    K = ind_bk.shape[1]
    pred = _gather_feat(feat_nchw, ind_bk)          # (B, K, D)
    s = pl.pallas_call(
        _regl1_kernel,
        out_shape=jax.ShapeDtypeStruct((2,), F32),
        grid=(B,),
        in_specs=[pl.BlockSpec((1, K, D), lambda b: (b, 0, 0)),
                  pl.BlockSpec((1, K, D), lambda b: (b, 0, 0)),
                  pl.BlockSpec((1, K, 1), lambda b: (b, 0, 0))],
        out_specs=pl.BlockSpec(memory_space=pltpu.MemorySpace.SMEM),
        compiler_params=pltpu.CompilerParams(dimension_semantics=("arbitrary",)),
    )(pred.astype(F32), target_bkd.astype(F32), mask_bk[:, :, None].astype(F32))
    return s[0] / (s[1] + 1e-4)


# ----------------------------------------------------------------------------
# ID loss (normalize + linear classifier + CE with ignore_index=-1), per batch
# ----------------------------------------------------------------------------
def _make_id_kernel(emb_scale):
    def kernel(x_ref, w_ref, b_ref, tgt_ref, valid_ref, s_ref):
        @pl.when(pl.program_id(0) == 0)
        def _():
            s_ref[0] = jnp.float32(0.0)
            s_ref[1] = jnp.float32(0.0)
        x = x_ref[0].astype(F32)                                    # (K, E)
        nrm = jnp.sqrt(jnp.sum(x * x, axis=-1, keepdims=True))
        xn = emb_scale * x / jnp.maximum(nrm, 1e-12)                # emb_scale*F.normalize
        logits = jnp.dot(xn, w_ref[...],
                         preferred_element_type=jnp.float32) + b_ref[...]
        tgt = tgt_ref[0]                                            # (K, 1) int32
        valid = jnp.logical_and(valid_ref[0] > 0.0, tgt >= 0)       # reg_mask>0 & id!=-1
        mx = jnp.max(logits, axis=-1, keepdims=True)
        lse = jnp.log(jnp.sum(jnp.exp(logits - mx), axis=-1, keepdims=True)) + mx
        cls = jax.lax.broadcasted_iota(jnp.int32, logits.shape, 1)
        tgt_safe = jnp.where(tgt >= 0, tgt, 0)
        picked = jnp.sum(jnp.where(cls == tgt_safe, logits, 0.0),
                         axis=-1, keepdims=True)
        ce = lse - picked
        vf = valid.astype(F32)
        s_ref[0] += jnp.sum(ce * vf)
        s_ref[1] += jnp.sum(vf)
    return kernel


def id_loss_fn(id_feat_nchw, ind_bk, reg_mask_bk, ids_bk, cls_w, cls_b, emb_scale):
    B, E = id_feat_nchw.shape[0], id_feat_nchw.shape[1]
    K = ind_bk.shape[1]
    id_head = _gather_feat(id_feat_nchw, ind_bk)            # (B, K, E)
    tgt = ids_bk[:, :, None].astype(jnp.int32)              # (B, K, 1)
    valid = (reg_mask_bk[:, :, None] > 0).astype(F32)       # (B, K, 1)
    s = pl.pallas_call(
        _make_id_kernel(float(emb_scale)),
        out_shape=jax.ShapeDtypeStruct((2,), F32),
        grid=(B,),
        in_specs=[pl.BlockSpec((1, K, E), lambda b: (b, 0, 0)),
                  pl.BlockSpec(memory_space=pltpu.MemorySpace.VMEM),   # classifier W (resident)
                  pl.BlockSpec(memory_space=pltpu.MemorySpace.VMEM),   # classifier b
                  pl.BlockSpec((1, K, 1), lambda b: (b, 0, 0)),
                  pl.BlockSpec((1, K, 1), lambda b: (b, 0, 0))],
        out_specs=pl.BlockSpec(memory_space=pltpu.MemorySpace.SMEM),
        compiler_params=pltpu.CompilerParams(dimension_semantics=("arbitrary",)),
    )(id_head.astype(F32), cls_w.astype(F32), cls_b.reshape(1, -1).astype(F32),
      tgt, valid)
    return s[0] / jnp.maximum(s[1], 1.0)


# ----------------------------------------------------------------------------
# fused count branch: sigmoid+NMS+binarize, Gaussian-19, box-19, SSIM-11 and
# every MSE / per-plane sum in a single pallas_call (only 6 scalars leave VMEM)
# ----------------------------------------------------------------------------
def _make_cnt_kernel(TB, H, W, conf, cw):
    C1 = 0.01 ** 2
    C2 = 0.03 ** 2

    def conv2(x, mh, mw):
        # depthwise separable 'same' conv as two banded matmuls (MXU)
        t = jnp.dot(mh, x, preferred_element_type=jnp.float32)
        return jnp.dot(t, mw, preferred_element_type=jnp.float32)

    def kernel(hm_ref, cnt_ref, cm_ref, mh_ref, mw_ref, acc_ref, padw_ref, padh_ref):
        @pl.when(pl.program_id(0) == 0)
        def _():
            for i in range(6):
                acc_ref[i] = jnp.float32(0.0)

        heat = jnp.clip(jax.nn.sigmoid(hm_ref[...]), 1e-4, 1.0 - 1e-4)   # _sigmoid(hm)
        cnt = jnp.maximum(cnt_ref[...], 0.0)      # relu(relu(.)) collapsed
        cm = cm_ref[...]
        img2 = cw * cm                            # cnt_weight * batch['cm']
        cnt_s = cnt / cw                          # output['cnt'] / cnt_weight

        # ---- _nms (3x3 max-pool peak keep) + binarize, separable max, zero
        #      boundary via small VMEM scratch (heat>=1e-4, so 0 acts as -inf)
        padw_ref[...] = jnp.zeros((TB, H, W + 2), F32)
        padw_ref[:, :, 1:W + 1] = heat
        xw = padw_ref[...]
        rmax = jnp.maximum(jnp.maximum(xw[:, :, 0:W], xw[:, :, 1:W + 1]),
                           xw[:, :, 2:W + 2])
        padh_ref[...] = jnp.zeros((TB, H + 2, W), F32)
        padh_ref[:, 1:H + 1, :] = rmax
        xh = padh_ref[...]
        hmax = jnp.maximum(jnp.maximum(xh[:, 0:H, :], xh[:, 1:H + 1, :]),
                           xh[:, 2:H + 2, :])
        heat_det = jnp.where(jnp.logical_and(hmax == heat, heat > conf),
                             1.0, 0.0).astype(F32)

        # ---- conv-free partial sums (batched over the whole plane block)
        d0 = cnt - img2
        s0 = jnp.sum(d0 * d0)                                 # density_loss numerator

        def plane_sums(x):                                    # (TB,H,W) -> (TB,1,1)
            return jnp.sum(jnp.sum(x, axis=2, keepdims=True), axis=1, keepdims=True)

        cm_sums = plane_sums(cm)
        d3 = plane_sums(heat_det) - cm_sums                   # cnt_det_sum - cnt_cm_sum
        d4 = plane_sums(cnt_s) - cm_sums                      # cnt_density_sum - cnt_cm_sum
        s3 = jnp.sum(d3 * d3)
        s4 = jnp.sum(d4 * d4)

        g19h = mh_ref[0]
        boxh = mh_ref[1]
        g11h = mh_ref[2]
        g19w = mw_ref[0]
        boxw = mw_ref[1]
        g11w = mw_ref[2]

        s1 = jnp.float32(0.0)
        s2 = jnp.float32(0.0)
        s5 = jnp.float32(0.0)
        for p in range(TB):                      # static unroll, TB kept small
            hd = heat_det[p]
            i1 = cnt[p]
            i2 = img2[p]
            cs = cnt_s[p]
            dd = conv2(hd, g19h, g19w)           # density_det = GaussianBlurConv(4.5,2)
            cdet = conv2(dd, boxh, boxw)         # cnt_det   = obj_cnt(density_det, 19)
            cheat = conv2(cs, boxh, boxw)        # cnt_heat  = obj_cnt(cnt/cw, 19)
            e1 = cdet - cheat
            s1 = s1 + jnp.sum(e1 * e1)
            e2 = cw * cs - cw * dd
            s2 = s2 + jnp.sum(e2 * e2)
            # SSIM (window 11, sigma 1.5)
            mu1 = conv2(i1, g11h, g11w)
            mu2 = conv2(i2, g11h, g11w)
            mu1_sq = mu1 * mu1
            mu2_sq = mu2 * mu2
            mu12 = mu1 * mu2
            sg1 = conv2(i1 * i1, g11h, g11w) - mu1_sq
            sg2 = conv2(i2 * i2, g11h, g11w) - mu2_sq
            sg12 = conv2(i1 * i2, g11h, g11w) - mu12
            ssim_map = ((2.0 * mu12 + C1) * (2.0 * sg12 + C2)) / (
                (mu1_sq + mu2_sq + C1) * (sg1 + sg2 + C2))
            s5 = s5 + jnp.sum(ssim_map)

        acc_ref[0] += s0
        acc_ref[1] += s1
        acc_ref[2] += s2
        acc_ref[3] += s3
        acc_ref[4] += s4
        acc_ref[5] += s5

    return kernel


def cnt_branch_losses(hm_raw, cnt_raw, cm, conf_thres, cnt_weight):
    # TODO(synk): SSIM_Loss source unavailable; standard window-11 sigma-1.5 SSIM
    # with loss = 1 - mean(ssim_map) assumed.
    B, C, H, W = cnt_raw.shape
    P = B * C
    plane = H * W * 4
    mats_b = 3 * (H * H + W * W) * 4
    cap = max(1, (_VMEM_BUDGET - 2 * mats_b) // (24 * plane))
    TB = _largest_divisor_leq(P, min(cap, 4))

    g19 = gaussian_1d(2 * int(4.5 * 2 + 0.5) + 1, 2.0)   # GaussianBlurConv(4.5,2): 19 taps
    box19 = np.ones(19, np.float32)                      # obj_cnt: avg_pool(19)*19*19
    g11 = gaussian_1d(11, 1.5)                           # SSIM window
    mats_h = jnp.asarray(np.stack([band_matrix(g19, H),
                                   band_matrix(box19, H),
                                   band_matrix(g11, H)]))
    mats_w = jnp.asarray(np.stack([band_matrix(g19, W).T,
                                   band_matrix(box19, W).T,
                                   band_matrix(g11, W).T]))

    acc = pl.pallas_call(
        _make_cnt_kernel(TB, H, W, float(conf_thres), float(cnt_weight)),
        out_shape=jax.ShapeDtypeStruct((6,), F32),
        grid=(P // TB,),
        in_specs=[pl.BlockSpec((TB, H, W), lambda i: (i, 0, 0)),
                  pl.BlockSpec((TB, H, W), lambda i: (i, 0, 0)),
                  pl.BlockSpec((TB, H, W), lambda i: (i, 0, 0)),
                  pl.BlockSpec(memory_space=pltpu.MemorySpace.VMEM),   # (3,H,H) band mats
                  pl.BlockSpec(memory_space=pltpu.MemorySpace.VMEM)],  # (3,W,W) band mats
        out_specs=pl.BlockSpec(memory_space=pltpu.MemorySpace.SMEM),
        scratch_shapes=[pltpu.VMEM((TB, H, W + 2), F32),
                        pltpu.VMEM((TB, H + 2, W), F32)],
        compiler_params=pltpu.CompilerParams(dimension_semantics=("arbitrary",)),
    )(hm_raw.reshape(P, H, W).astype(F32),
      cnt_raw.reshape(P, H, W).astype(F32),
      cm.reshape(P, H, W).astype(F32),
      mats_h, mats_w)

    numel = float(P * H * W)
    density_loss = acc[0] / numel
    dc_loss = acc[1] / numel + 0.01 * acc[3] / float(P)
    cd_loss = acc[2] / numel + 0.01 * acc[4] / float(P)
    ssim_loss = 1.0 - acc[5] / numel
    return density_loss, ssim_loss, dc_loss, cd_loss


# ----------------------------------------------------------------------------
# CMotLoss forward
# ----------------------------------------------------------------------------
def cmot_loss_forward(outputs, batch, params, opt):
    hm_loss, wh_loss, off_loss, id_loss = 0.0, 0.0, 0.0, 0.0
    dc_loss, cd_loss, ssim_loss, density_loss = 0.0, 0.0, 0.0, 0.0
    emb_scale = math.sqrt(2) * math.log(opt['nID'] - 1)

    for s in range(opt['num_stacks']):
        output = outputs[s]

        # hm: clamped sigmoid + focal loss (opt.mse_loss == False)
        hm_loss += focal_loss(output['hm'], batch['hm']) / opt['num_stacks']

        if opt['wh_weight'] > 0:
            wh_loss += reg_l1_loss(output['wh'], batch['reg_mask'],
                                   batch['ind'], batch['wh']) / opt['num_stacks']
        if opt['reg_offset'] and opt['off_weight'] > 0:
            off_loss += reg_l1_loss(output['reg'], batch['reg_mask'],
                                    batch['ind'], batch['reg']) / opt['num_stacks']
        if opt['id_weight'] > 0:
            id_loss += id_loss_fn(output['id'], batch['ind'], batch['reg_mask'],
                                  batch['ids'], params['cls_w'], params['cls_b'],
                                  emb_scale)
        if opt['cnt_weight'] > 0:
            # plain '=' (not '+=', not /num_stacks) matches the reference module
            density_loss, ssim_loss, dc_loss, cd_loss = cnt_branch_losses(
                output['hm'], output['cnt'], batch['cm'],
                opt['conf_thres'], opt['cnt_weight'])

    det_loss = (opt['hm_weight'] * hm_loss + opt['wh_weight'] * wh_loss
                + opt['off_weight'] * off_loss + dc_loss)
    cnt_loss = ssim_loss + density_loss + cd_loss

    s_det, s_id, s_cnt = params['s_det'], params['s_id'], params['s_cnt']
    loss = (jnp.exp(-s_det) * det_loss + jnp.exp(-s_id) * id_loss
            + jnp.exp(-s_cnt) * cnt_loss + (s_det + s_id + s_cnt))
    loss = loss * 0.5

    loss_stats = {'loss': loss, 'hm_loss': hm_loss, 'wh_loss': wh_loss,
                  'off_loss': off_loss, 'id_loss': id_loss,
                  'det_loss': det_loss, 'cnt_loss': cnt_loss}
    return loss, loss_stats


# ----------------------------------------------------------------------------
if __name__ == "__main__":
    key = jax.random.PRNGKey(0)
    B, C, H, W = 2, 1, 16, 16      # num_classes = 1
    K = 8                          # max objects per image
    E = 32                         # reid_dim (emb_dim)
    nID = 16

    opt = dict(num_stacks=1, mse_loss=False, reg_loss='l1', dense_wh=False,
               norm_wh=False, cat_spec_wh=False, reg_offset=True,
               hm_weight=1.0, wh_weight=0.1, off_weight=1.0, id_weight=1.0,
               cnt_weight=1.0, num_classes=C, reid_dim=E, nID=nID,
               conf_thres=0.4)

    ks = jax.random.split(key, 16)
    outputs = [dict(
        hm=jax.random.normal(ks[0], (B, C, H, W), F32),
        wh=jax.random.normal(ks[1], (B, 2, H, W), F32),
        reg=jax.random.normal(ks[2], (B, 2, H, W), F32) * 0.1,
        id=jax.random.normal(ks[3], (B, E, H, W), F32),
        cnt=jax.random.normal(ks[4], (B, C, H, W), F32),
    )]

    gt_hm = jax.random.uniform(ks[5], (B, C, H, W), F32, 0.0, 0.9)
    gt_hm = gt_hm.at[0, 0, 4, 4].set(1.0).at[0, 0, 10, 7].set(1.0).at[1, 0, 8, 8].set(1.0)
    reg_mask = jnp.zeros((B, K), F32).at[:, :4].set(1.0)
    ind = jax.random.randint(ks[6], (B, K), 0, H * W, jnp.int32)
    wh_t = jax.random.uniform(ks[7], (B, K, 2), F32, 0.0, 4.0)
    reg_t = jax.random.uniform(ks[8], (B, K, 2), F32, 0.0, 1.0)
    ids = jax.random.randint(ks[9], (B, K), 0, nID, jnp.int32)
    ids = ids.at[0, 1].set(-1)     # exercise ignore_index = -1
    cm = jax.random.uniform(ks[10], (B, C, H, W), F32, 0.0, 0.2)
    batch = dict(hm=gt_hm, reg_mask=reg_mask, ind=ind, wh=wh_t, reg=reg_t,
                 ids=ids, cm=cm)

    # deterministic parameters (nn.Linear(emb_dim, nID) + uncertainty scalars)
    cls_w = jax.random.normal(ks[11], (E, nID), F32) * (1.0 / math.sqrt(E))
    cls_b = jnp.zeros((nID,), F32)
    params = dict(cls_w=cls_w, cls_b=cls_b,
                  s_det=jnp.float32(-1.85), s_id=jnp.float32(-1.05),
                  s_cnt=jnp.float32(-1.05))

    loss, stats = cmot_loss_forward(outputs, batch, params, opt)
    loss = jax.block_until_ready(loss)
    assert bool(jnp.isfinite(loss)), "non-finite loss"
    print("KERNEL_OK")
</pallas_src>

<mosaic_0001>
module attributes {stable_mosaic.version = 11 : i64} {
  func.func @_focal_kernel(%arg0: i32, %arg1: memref<2x16x16xf32, #tpu.memory_space<vmem>>, %arg2: memref<2x16x16xf32, #tpu.memory_space<vmem>>, %arg3: memref<3xf32, #tpu.memory_space<smem>>) attributes {dimension_semantics = [#tpu.dimension_semantics<arbitrary>], iteration_bounds = array<i64: 1>, scalar_prefetch = 0 : i64, scratch_operands = 0 : i64, tpu.core_type = #tpu.core_type<tc>, window_params = [{transform_indices = @transform_0, window_bounds = array<i64: 2, 16, 16>}, {transform_indices = @transform_1, window_bounds = array<i64: 2, 16, 16>}, {transform_indices = @transform_2, window_bounds = array<i64: 3>}]} {
    %c0_i32 = arith.constant 0 : i32
    %0 = arith.cmpi eq, %arg0, %c0_i32 : i32
    %1 = arith.extui %0 : i1 to i32
    %c0_i32_0 = arith.constant 0 : i32
    %2 = arith.cmpi ne, %1, %c0_i32_0 : i32
    scf.if %2 {
      %cst_20 = arith.constant 0.000000e+00 : f32
      %c0_21 = arith.constant 0 : index
      %61 = memref.load %arg3[%c0_21] : memref<3xf32, #tpu.memory_space<smem>>
      memref.store %cst_20, %arg3[%c0_21] : memref<3xf32, #tpu.memory_space<smem>>
      %cst_22 = arith.constant 0.000000e+00 : f32
      %c1_23 = arith.constant 1 : index
      %62 = memref.load %arg3[%c1_23] : memref<3xf32, #tpu.memory_space<smem>>
      memref.store %cst_22, %arg3[%c1_23] : memref<3xf32, #tpu.memory_space<smem>>
      %cst_24 = arith.constant 0.000000e+00 : f32
      %c2_25 = arith.constant 2 : index
      %63 = memref.load %arg3[%c2_25] : memref<3xf32, #tpu.memory_space<smem>>
      memref.store %cst_24, %arg3[%c2_25] : memref<3xf32, #tpu.memory_space<smem>>
    } else {
    }
    %c0 = arith.constant 0 : index
    %c0_1 = arith.constant 0 : index
    %c0_2 = arith.constant 0 : index
    %3 = vector.load %arg1[%c0, %c0_1, %c0_2] : memref<2x16x16xf32, #tpu.memory_space<vmem>>, vector<2x16x16xf32>
    %4 = arith.negf %3 : vector<2x16x16xf32>
    %5 = math.exp %4 : vector<2x16x16xf32>
    %cst = arith.constant 1.000000e+00 : f32
    %6 = vector.broadcast %cst : f32 to vector<2x16x16xf32>
    %7 = arith.addf %6, %5 : vector<2x16x16xf32>
    %8 = arith.divf %6, %7 : vector<2x16x16xf32>
    %cst_3 = arith.constant 9.99999974E-5 : f32
    %cst_4 = arith.constant 0.999899983 : f32
    %9 = vector.broadcast %cst_3 : f32 to vector<2x16x16xf32>
    %10 = arith.maximumf %9, %8 : vector<2x16x16xf32>
    %11 = vector.broadcast %cst_4 : f32 to vector<2x16x16xf32>
    %12 = arith.minimumf %11, %10 : vector<2x16x16xf32>
    %c0_5 = arith.constant 0 : index
    %c0_6 = arith.constant 0 : index
    %c0_7 = arith.constant 0 : index
    %13 = vector.load %arg2[%c0_5, %c0_6, %c0_7] : memref<2x16x16xf32, #tpu.memory_space<vmem>>, vector<2x16x16xf32>
    %cst_8 = arith.constant 1.000000e+00 : f32
    %14 = vector.broadcast %cst_8 : f32 to vector<2x16x16xf32>
    %15 = arith.cmpf oeq, %13, %14 : vector<2x16x16xf32>
    %16 = arith.extui %15 : vector<2x16x16xi1> to vector<2x16x16xi32>
    %17 = arith.sitofp %16 : vector<2x16x16xi32> to vector<2x16x16xf32>
    %cst_9 = arith.constant 1.000000e+00 : f32
    %18 = vector.broadcast %cst_9 : f32 to vector<2x16x16xf32>
    %19 = arith.cmpf olt, %13, %18 : vector<2x16x16xf32>
    %20 = arith.extui %19 : vector<2x16x16xi1> to vector<2x16x16xi32>
    %21 = arith.sitofp %20 : vector<2x16x16xi32> to vector<2x16x16xf32>
    %cst_10 = arith.constant 1.000000e+00 : f32
    %22 = vector.broadcast %cst_10 : f32 to vector<2x16x16xf32>
    %23 = arith.subf %22, %13 : vector<2x16x16xf32>
    %24 = arith.mulf %23, %23 : vector<2x16x16xf32>
    %25 = arith.mulf %23, %23 : vector<2x16x16xf32>
    %26 = arith.mulf %24, %25 : vector<2x16x16xf32>
    %27 = math.log %12 : vector<2x16x16xf32>
    %cst_11 = arith.constant 1.000000e+00 : f32
    %28 = vector.broadcast %cst_11 : f32 to vector<2x16x16xf32>
    %29 = arith.subf %28, %12 : vector<2x16x16xf32>
    %30 = arith.mulf %29, %29 : vector<2x16x16xf32>
    %31 = arith.mulf %27, %30 : vector<2x16x16xf32>
    %32 = arith.mulf %31, %17 : vector<2x16x16xf32>
    %cst_12 = arith.constant 1.000000e+00 : f32
    %33 = vector.broadcast %cst_12 : f32 to vector<2x16x16xf32>
    %34 = arith.subf %33, %12 : vector<2x16x16xf32>
    %35 = math.log %34 : vector<2x16x16xf32>
    %36 = arith.mulf %12, %12 : vector<2x16x16xf32>
    %37 = arith.mulf %35, %36 : vector<2x16x16xf32>
    %38 = arith.mulf %37, %26 : vector<2x16x16xf32>
    %39 = arith.mulf %38, %21 : vector<2x16x16xf32>
    %c0_13 = arith.constant 0 : index
    %40 = memref.load %arg3[%c0_13] : memref<3xf32, #tpu.memory_space<smem>>
    %41 = vector.shape_cast %32 : vector<2x16x16xf32> to vector<1x2x16x16xf32>
    %cst_14 = arith.constant dense<0.000000e+00> : vector<1xf32>
    %42 = vector.multi_reduction <add>, %41, %cst_14 [1, 2, 3] : vector<1x2x16x16xf32> to vector<1xf32>
    %43 = vector.shape_cast %42 : vector<1xf32> to vector<1x1x1x1xf32>
    %44 = vector.extract %43[0, 0, 0, 0] : f32 from vector<1x1x1x1xf32>
    %45 = arith.addf %40, %44 : f32
    %c0_15 = arith.constant 0 : index
    %46 = memref.load %arg3[%c0_15] : memref<3xf32, #tpu.memory_space<smem>>
    memref.store %45, %arg3[%c0_15] : memref<3xf32, #tpu.memory_space<smem>>
    %c1 = arith.constant 1 : index
    %47 = memref.load %arg3[%c1] : memref<3xf32, #tpu.memory_space<smem>>
    %48 = vector.shape_cast %39 : vector<2x16x16xf32> to vector<1x2x16x16xf32>
    %cst_16 = arith.constant dense<0.000000e+00> : vector<1xf32>
    %49 = vector.multi_reduction <add>, %48, %cst_16 [1, 2, 3] : vector<1x2x16x16xf32> to vector<1xf32>
    %50 = vector.shape_cast %49 : vector<1xf32> to vector<1x1x1x1xf32>
    %51 = vector.extract %50[0, 0, 0, 0] : f32 from vector<1x1x1x1xf32>
    %52 = arith.addf %47, %51 : f32
    %c1_17 = arith.constant 1 : index
    %53 = memref.load %arg3[%c1_17] : memref<3xf32, #tpu.memory_space<smem>>
    memref.store %52, %arg3[%c1_17] : memref<3xf32, #tpu.memory_space<smem>>
    %c2 = arith.constant 2 : index
    %54 = memref.load %arg3[%c2] : memref<3xf32, #tpu.memory_space<smem>>
    %55 = vector.shape_cast %17 : vector<2x16x16xf32> to vector<1x2x16x16xf32>
    %cst_18 = arith.constant dense<0.000000e+00> : vector<1xf32>
    %56 = vector.multi_reduction <add>, %55, %cst_18 [1, 2, 3] : vector<1x2x16x16xf32> to vector<1xf32>
    %57 = vector.shape_cast %56 : vector<1xf32> to vector<1x1x1x1xf32>
    %58 = vector.extract %57[0, 0, 0, 0] : f32 from vector<1x1x1x1xf32>
    %59 = arith.addf %54, %58 : f32
    %c2_19 = arith.constant 2 : index
    %60 = memref.load %arg3[%c2_19] : memref<3xf32, #tpu.memory_space<smem>>
    memref.store %59, %arg3[%c2_19] : memref<3xf32, #tpu.memory_space<smem>>
    return
  }
  func.func @transform_0(%arg0: i32) -> (i32, i32, i32) {
    %c0_i32 = arith.constant 0 : i32
    %c0_i32_0 = arith.constant 0 : i32
    %c0_i32_1 = arith.constant 0 : i32
    return %arg0, %c0_i32, %c0_i32_0 : i32, i32, i32
  }
  func.func @transform_1(%arg0: i32) -> (i32, i32, i32) {
    %c0_i32 = arith.constant 0 : i32
    %c0_i32_0 = arith.constant 0 : i32
    %c0_i32_1 = arith.constant 0 : i32
    return %arg0, %c0_i32, %c0_i32_0 : i32, i32, i32
  }
  func.func @transform_2(%arg0: i32) -> i32 {
    %c0_i32 = arith.constant 0 : i32
    %c0_i32_0 = arith.constant 0 : i32
    return %c0_i32 : i32
  }
}

</mosaic_0001>

<bundles_post_ra>
// kernel: tpu_custom_call.1
= control target key start
LH: loop header
LB: loop body
LE: loop exit
PB: predicated region body
PF: predicated region fallthrough
CT: control target
= control target key end

     0   :  { %7 = vsyncpa [#allocation3], 0  ;;  %s453_s0 = inlined_call_operand.hbm [shape: f32[2,16,16], index: 0, kind: input, shape index: {}]   ;;  %s454_s1 = inlined_call_operand.hbm [shape: f32[2,16,16], index: 1, kind: input, shape index: {}]   ;;  %s455_s2 = inlined_call_operand.hbm [shape: f32[3], index: 2, kind: output, shape index: {}]  }
   0x1   :  { %8 = vsyncpa [#allocation6], 0 }
   0x2   :  { %9 = vsyncpa [#allocation4], 0  ;;  %s363_s9 = smov [#allocation2]  }
   0x3   :  { %s15_s10 = sshll.u32 %s363_s9, 4  ;;  %s16_s10 = int_to_ptr.vmem [resolvable:$true] %s15_s10 }
   0x4   :  { %s317_s11 = scalar_lea.vmem %s16_s10, 512  ;;  %p322_p1 = scmp.lt.s32.totalorder %s16_s10, %s16_s10 }
   0x5   :  { %p318_p0 = scmp.ne.s32.totalorder %s16_s10, %s317_s11  ;;  %p323_p2 = scmp.lt.s32.totalorder %s317_s11, %s317_s11 }
   0x7   :  { %p324_p3 = por %p323_p2, %p322_p1 }
   0x9   :  { %p325_p4 = pnand %p324_p3, %p318_p0 }
   0xb   :  { %328 = shalt.err (!%p325_p4)
}
   0xc   :  { %s364_s12 = smov 128   ;;  %s365_s13 = smov 8  }
   0xd   :  { %21 = dma.hbm_to_vmem [thread:$0]  %s453_s0, 512, %s16_s10, [#allocation3], %s364_s12, %s364_s12, %s365_s13  }
   0xe   :  { %s366_s16 = smov [#allocation5]  }
   0xf   :  { %s27_s17 = sshll.u32 %s366_s16, 4  ;;  %s28_s17 = int_to_ptr.vmem [resolvable:$true] %s27_s17 }
  0x10   :  { %s337_s18 = scalar_lea.vmem %s28_s17, 512  ;;  %p342_p6 = scmp.lt.s32.totalorder %s28_s17, %s28_s17 }
  0x11   :  { %p338_p5 = scmp.ne.s32.totalorder %s28_s17, %s337_s18  ;;  %p343_p7 = scmp.lt.s32.totalorder %s337_s18, %s337_s18 }
  0x13   :  { %p344_p8 = por %p343_p7, %p342_p6 }
  0x15   :  { %p345_p9 = pnand %p344_p8, %p338_p5 }
  0x17   :  { %348 = shalt.err (!%p345_p9)
}
  0x18   :  { %33 = dma.hbm_to_vmem [thread:$0]  %s454_s1, 512, %s28_s17, [#allocation6], %s364_s12, %s364_s12, %s365_s13  }
  0x19   :  { %357 = dma.done.wait [#allocation3], 512  }
  0x1a   :  { %358 = vsyncadd [#allocation3], 4294966784 }
  0x1b   :  { %359 = dma.done.wait [#allocation6], 512  }
  0x1c   :  { %360 = vsyncadd [#allocation6], 4294966784  ;;  %v390_v0 = vld [vmem:[#allocation5] sm:$0xff]  ;;  %v392_v1 = vld [vmem:[#allocation5 + $0x8] sm:$0xff]  ;;  %vm175_vm3 = vcmask 130048   ;;  %v367_v4 = vmov 0.0  }
  0x1d   :  { %v394_v2 = vld [vmem:[#allocation5 + $0x10] sm:$0xff]  ;;  %v396_v3 = vld [vmem:[#allocation5 + $0x18] sm:$0xff]  ;;  %vm90_vm0 = vcmp.eq.f32.partialorder %v390_v0, 1.0  ;;  %vm91_vm1 = vcmp.eq.f32.partialorder %v392_v1, 1.0  ;;  %v50_v9 = vld [vmem:[#allocation2] sm:$0xff]  ;;  %v114_v48 = vsub.f32 1.0, %v390_v0 }
  0x1e   :  { %vm92_vm2 = vcmp.eq.f32.partialorder %v394_v2, 1.0  ;;  %vm93_vm4 = vcmp.eq.f32.partialorder %v396_v3, 1.0  ;;  %v403_v5 = vsel %vm90_vm0, 1.0, %v367_v4  ;;  %v406_v6 = vsel %vm91_vm1, 1.0, %v367_v4  ;;  %v51_v10 = vld [vmem:[#allocation2 + $0x8] sm:$0xff]  ;;  %v52_v14 = vld [vmem:[#allocation2 + $0x10] sm:$0xff] }
  0x1f   :  { %v409_v7 = vsel %vm92_vm2, 1.0, %v367_v4  ;;  %v412_v8 = vsel %vm93_vm4, 1.0, %v367_v4  ;;  %v216_v11 = vsel %vm175_vm3, %v403_v5, 0.0  ;;  %v217_v12 = vsel %vm175_vm3, %v406_v6, 0.0  ;;  %v53_v15 = vld [vmem:[#allocation2 + $0x18] sm:$0xff]  ;;  %s368_s22 = smov [#allocation7]  }
  0x20   :  { %v219_v13 = vsel %vm175_vm3, %v409_v7, 0.0  ;;  %v218_v16 = vadd.f32 %v217_v12, %v216_v11  ;;  %v221_v17 = vsel %vm175_vm3, %v412_v8, 0.0  ;;  %v250_v18 = vmul.f32 -1.442695, %v50_v9 }
  0x21   :  { %v251_v19 = vmul.f32 -1.442695, %v51_v10  ;;  %v252_v21 = vmul.f32 -1.442695, %v52_v14  ;;  %v253_v22 = vmul.f32 -1.442695, %v53_v15  ;;  %v118_v52 = vmul.f32 %v114_v48, %v114_v48 }
  0x22   :  { %v220_v20 = vadd.f32 %v219_v13, %v218_v16  ;;  %277 = vpow2.f32 %v250_v18  ;;  %v115_v49 = vsub.f32 1.0, %v392_v1  ;;  %v116_v50 = vsub.f32 1.0, %v394_v2 }
  0x23   :  { %279 = vpow2.f32 %v251_v19  ;;  %v117_v51 = vsub.f32 1.0, %v396_v3  ;;  %vm102_vm5 = vcmp.lt.f32.partialorder %v390_v0, 1.0  ;;  %vm103_vm6 = vcmp.lt.f32.partialorder %v392_v1, 1.0 }
  0x24   :  { %v222_v23 = vadd.f32 %v221_v17, %v220_v20  ;;  %281 = vpow2.f32 %v252_v21  ;;  %v119_v53 = vmul.f32 %v115_v49, %v115_v49  ;;  %v120_v54 = vmul.f32 %v116_v50, %v116_v50 }
  0x25   :  { %283 = vpow2.f32 %v253_v22  ;;  %v121_v57 = vmul.f32 %v117_v51, %v117_v51  ;;  %vm104_vm7 = vcmp.lt.f32.partialorder %v394_v2, 1.0  ;;  %vm105_vm8 = vcmp.lt.f32.partialorder %v396_v3, 1.0 }
  0x26   :  { %223 = vadd.xlane.f32.xlu1 %v222_v23  ;;  %v258_v62 = vsel %vm102_vm5, 1.0, %v367_v4  ;;  %v259_v63 = vsel %vm103_vm6, 1.0, %v367_v4  ;;  %v122_v1 = vmul.f32 %v118_v52, %v118_v52  ;;  %v123_v11 = vmul.f32 %v119_v53, %v119_v53 }
  0x27   :  { %v124_v15 = vmul.f32 %v120_v54, %v120_v54  ;;  %v125_v20 = vmul.f32 %v121_v57, %v121_v57 }
  0x2f   :  { %v278_v24 = vpop.eup %277 }
  0x30   :  { %v280_v25 = vpop.eup %279  ;;  %v66_v26 = vadd.f32 1.0, %v278_v24 }
  0x31   :  { %v282_v27 = vpop.eup %281  ;;  %v67_v28 = vadd.f32 1.0, %v280_v25 }
  0x32   :  { %v284_v29 = vpop.eup %283  ;;  %v68_v30 = vadd.f32 1.0, %v282_v27  ;;  %285 = vrcp.f32 %v66_v26 }
  0x33   :  { %v69_v31 = vadd.f32 1.0, %v284_v29  ;;  %287 = vrcp.f32 %v67_v28 }
  0x34   :  { %289 = vrcp.f32 %v68_v30 }
  0x35   :  { %291 = vrcp.f32 %v69_v31 }
  0x3f   :  { %v286_v32 = vpop.eup %285 }
  0x40   :  { %v288_v33 = vpop.eup %287  ;;  %v78_v34 = vmax.f32 %v286_v32, 0.0001 }
  0x41   :  { %v290_v35 = vpop.eup %289  ;;  %v79_v36 = vmax.f32 %v288_v33, 0.0001 }
  0x42   :  { %v292_v37 = vpop.eup %291  ;;  %v80_v38 = vmax.f32 %v290_v35, 0.0001  ;;  %v82_v39 = vmin.f32 %v78_v34, 0.9999 }
  0x43   :  { %v81_v40 = vmax.f32 %v292_v37, 0.0001  ;;  %v83_v41 = vmin.f32 %v79_v36, 0.9999 }
  0x44   :  { %v84_v42 = vmin.f32 %v80_v38, 0.9999  ;;  %293 = vlog2.f32 %v82_v39  ;;  %v134_v43 = vsub.f32 1.0, %v82_v39  ;;  %v158_v16 = vmul.f32 %v82_v39, %v82_v39 }
  0x45   :  { %v85_v44 = vmin.f32 %v81_v40, 0.9999  ;;  %295 = vlog2.f32 %v83_v41  ;;  %v135_v45 = vsub.f32 1.0, %v83_v41  ;;  %v159_v21 = vmul.f32 %v83_v41, %v83_v41 }
  0x46   :  { %297 = vlog2.f32 %v84_v42  ;;  %v136_v46 = vsub.f32 1.0, %v84_v42  ;;  %v138_v55 = vmul.f32 %v134_v43, %v134_v43  ;;  %v160_v26 = vmul.f32 %v84_v42, %v84_v42 }
  0x47   :  { %299 = vlog2.f32 %v85_v44  ;;  %v137_v47 = vsub.f32 1.0, %v85_v44  ;;  %v139_v58 = vmul.f32 %v135_v45, %v135_v45  ;;  %v161_v31 = vmul.f32 %v85_v44, %v85_v44 }
  0x48   :  { %301 = vlog2.f32 %v134_v43  ;;  %v140_v61 = vmul.f32 %v136_v46, %v136_v46 }
  0x49   :  { %303 = vlog2.f32 %v135_v45  ;;  %v141_v10 = vmul.f32 %v137_v47, %v137_v47 }
  0x4a   :  { %305 = vlog2.f32 %v136_v46 }
  0x4b   :  { %307 = vlog2.f32 %v137_v47 }
  0x51   :  { %v294_v56 = vpop.eup %293 }
  0x52   :  { %v296_v59 = vpop.eup %295  ;;  %v127_v60 = vmul.f32 0.6931472, %v294_v56 }
  0x53   :  { %v298_v9 = vpop.eup %297  ;;  %v129_v0 = vmul.f32 0.6931472, %v296_v59 }
  0x54   :  { %v300_v12 = vpop.eup %299  ;;  %v131_v13 = vmul.f32 0.6931472, %v298_v9  ;;  %v142_v14 = vmul.f32 %v138_v55, %v127_v60 }
  0x55   :  { %v302_v17 = vpop.eup %301  ;;  %v133_v18 = vmul.f32 0.6931472, %v300_v12  ;;  %v143_v19 = vmul.f32 %v139_v58, %v129_v0 }
  0x56   :  { %v304_v22 = vpop.eup %303  ;;  %v144_v23 = vmul.f32 %v140_v61, %v131_v13  ;;  %v146_v24 = vmul.f32 %v403_v5, %v142_v14  ;;  %v151_v25 = vmul.f32 0.6931472, %v302_v17 }
  0x57   :  { %v306_v27 = vpop.eup %305  ;;  %v145_v28 = vmul.f32 %v141_v10, %v133_v18  ;;  %v147_v29 = vmul.f32 %v406_v6, %v143_v19  ;;  %v153_v30 = vmul.f32 0.6931472, %v304_v22 }
  0x58   :  { %v308_v32 = vpop.eup %307  ;;  %v148_v33 = vmul.f32 %v409_v7, %v144_v23  ;;  %v176_v34 = vsel %vm175_vm3, %v146_v24, 0.0  ;;  %v155_v35 = vmul.f32 0.6931472, %v306_v27  ;;  %v162_v36 = vmul.f32 %v158_v16, %v151_v25 }
  0x59   :  { %v149_v37 = vmul.f32 %v412_v8, %v145_v28  ;;  %v177_v38 = vsel %vm175_vm3, %v147_v29, 0.0  ;;  %v157_v5 = vmul.f32 0.6931472, %v308_v32  ;;  %v163_v39 = vmul.f32 %v159_v21, %v153_v30 }
  0x5a   :  { %v178_v40 = vadd.f32 %v177_v38, %v176_v34  ;;  %v179_v41 = vsel %vm175_vm3, %v148_v33, 0.0  ;;  %v164_v42 = vmul.f32 %v160_v26, %v155_v35  ;;  %v166_v6 = vmul.f32 %v162_v36, %v122_v1 }
  0x5b   :  { %v181_v43 = vsel %vm175_vm3, %v149_v37, 0.0  ;;  %v260_v7 = vsel %vm104_vm7, 1.0, %v367_v4  ;;  %v165_v44 = vmul.f32 %v161_v31, %v157_v5  ;;  %v167_v45 = vmul.f32 %v163_v39, %v123_v11 }
  0x5c   :  { %v180_v46 = vadd.f32 %v179_v41, %v178_v40  ;;  %v261_v8 = vsel %vm105_vm8, 1.0, %v367_v4  ;;  %v168_v47 = vmul.f32 %v164_v42, %v124_v15  ;;  %v170_v48 = vmul.f32 %v258_v62, %v166_v6 }
  0x5d   :  { %v169_v49 = vmul.f32 %v165_v44, %v125_v20  ;;  %v171_v50 = vmul.f32 %v259_v63, %v167_v45 }
  0x5e   :  { %v182_v51 = vadd.f32 %v181_v43, %v180_v46  ;;  %v172_v52 = vmul.f32 %v260_v7, %v168_v47  ;;  %v196_v53 = vsel %vm175_vm3, %v170_v48, 0.0 }
  0x5f   :  { %v173_v54 = vmul.f32 %v261_v8, %v169_v49  ;;  %v197_v55 = vsel %vm175_vm3, %v171_v50, 0.0 }
  0x60   :  { %183 = vadd.xlane.f32.xlu0 %v182_v51  ;;  %v198_v2 = vadd.f32 %v197_v55, %v196_v53  ;;  %v199_v56 = vsel %vm175_vm3, %v172_v52, 0.0 }
  0x61   :  { %v201_v57 = vsel %vm175_vm3, %v173_v54, 0.0 }
  0x62   :  { %v200_v58 = vadd.f32 %v199_v56, %v198_v2 }
  0x64   :  { %v202_v3 = vadd.f32 %v201_v57, %v200_v58 }
  0x66   :  { %203 = vadd.xlane.f32.xlu0 %v202_v3 }
  0xaf   :  { %v224_v4 = vpop.xlane.xlu1 %223 }
  0xb0   :  { %v225_v59 = vrot.slane %v224_v4, 4 }
  0xb2   :  { %v226_v62 = vadd.f32 %v225_v59, %v224_v4 }
  0xb4   :  { %v227_v0 = vrot.slane %v226_v62, 2 }
  0xb6   :  { %v228_v14 = vadd.f32 %v227_v0, %v226_v62 }
  0xb8   :  { %v229_v18 = vrot.slane %v228_v14, 1 }
  0xba   :  { %v230_v21 = vadd.f32 %v229_v18, %v228_v14 }
  0xe9   :  { %v184_v60 = vpop.xlane.xlu0 %183 }
  0xea   :  { %v185_v61 = vrot.slane %v184_v60, 4 }
  0xec   :  { %v186_v63 = vadd.f32 %v185_v61, %v184_v60 }
  0xee   :  { %v187_v9 = vrot.slane %v186_v63, 2 }
  0xef   :  { %v204_v10 = vpop.xlane.xlu0 %203 }
  0xf0   :  { %v205_v1 = vrot.slane %v204_v10, 4  ;;  %v188_v11 = vadd.f32 %v187_v9, %v186_v63 }
  0xf2   :  { %v206_v12 = vadd.f32 %v205_v1, %v204_v10  ;;  %v189_v13 = vrot.slane %v188_v11, 1 }
  0xf4   :  { %v207_v15 = vrot.slane %v206_v12, 2  ;;  %v190_v16 = vadd.f32 %v189_v13, %v188_v11 }
  0xf6   :  { %v208_v17 = vadd.f32 %v207_v15, %v206_v12  ;;  %264 = vpush %v190_v16 }
  0xf8   :  { %v209_v19 = vrot.slane %v208_v17, 1 }
  0xfa   :  { %v210_v20 = vadd.f32 %v209_v19, %v208_v17 }
  0xfc   :  { %266 = vpush %v210_v20 }
  0xfd   :  { %268 = vpush %v230_v21 }
 0x127   :  { %s265_s0 = spop %264 }
 0x128   :  { %194 = sst [smem:[#allocation7]] %s265_s0 }
 0x12d   :  { %s267_s1 = spop %266 }
 0x12e   :  { %s269_s21 = spop %268  ;;  %214 = sst [smem:[#allocation7 + $0x1]] %s267_s1 }
 0x12f   :  { %234 = sst [smem:[#allocation7 + $0x2]] %s269_s21 }
 0x130   :  { %242 = dma.smem_to_hbm %s368_s22, 16, %s455_s2, [#allocation4]  }
 0x131   :  { %361 = dma.done.wait [#allocation4], 16  }
 0x132   :  { %362 = vsyncadd [#allocation4], 4294967280 }
 0x133   :  { %246 = sfence }
 0x134   :  { %247 = vsyncpa [#allocation3], 1 }
 0x135   :  { %248 = vsyncpa [#allocation6], 1 }
 0x136   :  { %249 = vsyncpa [#allocation4], 1 }

</bundles_post_ra>
